<compile_context>
chip_gen: v7x
topology: tpu7x:2x2x1
jax: 0.10.0
libtpu: 0.0.40
codegen_flags: <defaults>
</compile_context>

<pallas_src>
import functools

import jax
import jax.numpy as jnp
from jax.experimental import pallas as pl
from jax.experimental.pallas import tpu as pltpu


NEG_BIG = -1e30  # bias for padded vocab columns -> softmax prob ~ 0


def _round_up(x, m):
    return ((x + m - 1) // m) * m


def _vmem_capacity_bytes():
    try:
        return int(pltpu.get_tpu_info().vmem_capacity_bytes)
    except Exception:
        return 64 * 1024 * 1024  # conservative default (v7x-sized per-TC VMEM)


def _decoder_kernel(x_ref, w_ref, b_ref, o_ref, m_ref, l_ref, *, nj, tn):
    """One (batch tile i, vocab tile j) grid step.

    x_ref: (tb, E_pad)  bf16
    w_ref: (E_pad, tn)  bf16   (vocab tile j of the weight)
    b_ref: (1, tn)      f32    (vocab tile j of the bias; padded cols = -1e30)
    o_ref: (tb, D_pad)  out dtype, resident across the vocab (j) axis
    m_ref: (tb, 1)      f32    running row max
    l_ref: (tb, 1)      f32    row exp-sum (epilogue)
    """
    j = pl.program_id(1)

    # Partial logits for this vocab tile; f32 accumulation on the MXU.
    logits = jnp.dot(x_ref[...], w_ref[...], preferred_element_type=jnp.float32)
    logits = logits + b_ref[...]                               # (tb, tn)

    # Stage directly into the resident output block (no extra full-row scratch).
    off = pl.multiple_of(j * tn, 128)
    o_ref[:, pl.ds(off, tn)] = logits.astype(o_ref.dtype)

    # Online running row max (overlaps with MXU work of subsequent tiles).
    tile_max = jnp.max(logits, axis=-1, keepdims=True)         # (tb, 1)

    @pl.when(j == 0)
    def _():
        m_ref[...] = jnp.full_like(m_ref, -jnp.inf)

    m_ref[...] = jnp.maximum(m_ref[...], tile_max)

    # Epilogue on the last vocab tile: chunked exp/sum, then chunked normalize.
    @pl.when(j == nj - 1)
    def _():
        m = m_ref[...]
        l_ref[...] = jnp.zeros_like(l_ref)
        for c in range(nj):                       # static, lane-dense tn-wide chunks
            sl = pl.ds(c * tn, tn)
            e = jnp.exp(o_ref[:, sl].astype(jnp.float32) - m)
            o_ref[:, sl] = e.astype(o_ref.dtype)
            l_ref[...] = l_ref[...] + jnp.sum(e, axis=-1, keepdims=True)
        inv = 1.0 / l_ref[...]                    # exact reciprocal: rows sum to 1
        for c in range(nj):
            sl = pl.ds(c * tn, tn)
            o_ref[:, sl] = (o_ref[:, sl].astype(jnp.float32) * inv).astype(o_ref.dtype)


class PallasDecoder:
    """softmax(x @ W + b, axis=-1); W stored as (in_features, out_features)."""

    def __init__(self, w, b, *, out_dtype=jnp.float32, tn_max=None, tb_max=None):
        E, D = w.shape
        assert b.shape == (D,)
        self.E, self.D = E, D
        self.out_dtype = jnp.dtype(out_dtype)

        cap = _vmem_capacity_bytes()
        self._cap = cap

        # Vocab tile: bigger on 128 MiB parts (v5e/v6e), smaller on 64 MiB (v7x).
        if tn_max is None:
            tn_max = 1024 if cap >= (96 << 20) else 512
        if tb_max is None:
            tb_max = 512 if cap >= (96 << 20) else 256
        self.tb_max = int(tb_max)

        E_pad = _round_up(E, 128)
        D_pad = _round_up(D, 128)
        tn = min(int(tn_max), D_pad)
        D_pad = _round_up(D_pad, tn)
        self.E_pad, self.D_pad, self.tn = E_pad, D_pad, tn

        # One-time weight/bias padding + bf16 cast (hoisted off the per-call path).
        self.w_p = jnp.zeros((E_pad, D_pad), jnp.bfloat16).at[:E, :D].set(
            w.astype(jnp.bfloat16))
        self.b_p = jnp.full((1, D_pad), NEG_BIG, jnp.float32).at[:, :D].set(
            jnp.reshape(b, (1, D)).astype(jnp.float32))

    # ---- tiling / VMEM accounting -------------------------------------------
    def _footprint(self, tb):
        ob = self.out_dtype.itemsize
        return (2 * tb * self.E_pad * 2          # x tile, bf16, double-buffered
                + 2 * self.E_pad * self.tn * 2   # weight tile, bf16, double-buffered
                + 2 * self.tn * 4                # bias tile, f32, double-buffered
                + 2 * tb * self.D_pad * ob       # resident output, double-buffered
                + 2 * tb * 128 * 4)              # (tb,1) m/l scratches (lane-padded)

    def _plan_batch(self, B):
        budget = int(self._cap * 0.7)
        tb = self.tb_max
        while tb > 16 and self._footprint(tb) > budget:
            tb //= 2
        tb = max(tb, 16)
        B16 = _round_up(B, 16)                   # bf16 sublane packing
        if B16 < tb:
            tb = B16                             # single batch tile covers all rows
        B_pad = _round_up(B16, tb)
        return tb, B_pad

    # ---- forward -------------------------------------------------------------
    def __call__(self, x):
        B, E = x.shape
        assert E == self.E, "input feature dim must match decoder emb_dim"

        tb, B_pad = self._plan_batch(B)
        E_pad, D_pad, tn = self.E_pad, self.D_pad, self.tn
        grid = (B_pad // tb, D_pad // tn)
        nj = grid[1]

        # Pad/cast the activations only if needed.
        if (B, E) == (B_pad, E_pad) and x.dtype == jnp.bfloat16:
            x_p = x
        else:
            x_p = jnp.zeros((B_pad, E_pad), jnp.bfloat16).at[:B, :E].set(
                x.astype(jnp.bfloat16))

        out_bytes = self.out_dtype.itemsize
        cost = pl.CostEstimate(
            flops=2 * B_pad * E_pad * D_pad,
            transcendentals=B_pad * D_pad,
            bytes_accessed=(x_p.size * 2
                            + self.w_p.size * 2 * grid[0]  # weight re-streamed per batch tile
                            + self.b_p.size * 4 * grid[0]
                            + B_pad * D_pad * out_bytes),
        )

        need = self._footprint(tb)
        vmem_limit = int(min(self._cap, max(need + need // 4 + (2 << 20), 32 << 20)))

        kernel = functools.partial(_decoder_kernel, nj=nj, tn=tn)

        out = pl.pallas_call(
            kernel,
            out_shape=jax.ShapeDtypeStruct((B_pad, D_pad), self.out_dtype),
            grid_spec=pltpu.PrefetchScalarGridSpec(
                num_scalar_prefetch=0,
                grid=grid,
                in_specs=[
                    pl.BlockSpec((tb, E_pad), lambda i, j: (i, 0)),   # x batch tile
                    pl.BlockSpec((E_pad, tn), lambda i, j: (0, j)),   # weight vocab tile
                    pl.BlockSpec((1, tn), lambda i, j: (0, j)),       # bias vocab tile
                ],
                out_specs=pl.BlockSpec((tb, D_pad), lambda i, j: (i, 0)),
                scratch_shapes=[
                    pltpu.VMEM((tb, 1), jnp.float32),   # running row max
                    pltpu.VMEM((tb, 1), jnp.float32),   # row exp-sum
                ],
            ),
            compiler_params=pltpu.CompilerParams(
                dimension_semantics=("parallel", "arbitrary"),
                vmem_limit_bytes=vmem_limit,
            ),
            cost_estimate=cost,
        )(x_p, self.w_p, self.b_p)

        return out[:B, :self.D]


def decoder_forward(x, w, b, **kwargs):
    """Convenience one-shot wrapper (prefer PallasDecoder for repeated calls)."""
    return PallasDecoder(w, b, **kwargs)(x)


def decoder_reference(x, w, b):
    # Reference with the same bf16 input rounding (f32 math) as the kernel.
    x_bf = x.astype(jnp.bfloat16).astype(jnp.float32)
    w_bf = w.astype(jnp.bfloat16).astype(jnp.float32)
    logits = x_bf @ w_bf + jnp.reshape(b, (1, -1))
    return jax.nn.softmax(logits, axis=-1)


if __name__ == "__main__":
    # Small shapes consistent with the module: emb_dim=32, output_dim=64, batch=4.
    B, EMB_DIM, OUTPUT_DIM = 4, 32, 64

    key = jax.random.PRNGKey(0)
    kx, kw, kb = jax.random.split(key, 3)

    x = jax.random.normal(kx, (B, EMB_DIM), dtype=jnp.float32)
    # nn.Linear(emb_dim, output_dim) weights, stored as (in_features, out_features).
    w = jax.random.normal(kw, (EMB_DIM, OUTPUT_DIM), dtype=jnp.float32) * 0.1
    b = jax.random.normal(kb, (OUTPUT_DIM,), dtype=jnp.float32) * 0.1

    decoder = PallasDecoder(w, b)          # weight padding/cast hoisted here (once)
    out = decoder(x)
    out = jax.block_until_ready(out)

    ref = decoder_reference(x, w, b)
    assert out.shape == (B, OUTPUT_DIM)
    assert jnp.allclose(out, ref, atol=2e-3, rtol=2e-3), "mismatch vs reference"
    # Exact divide in the epilogue -> rows sum to 1 within f32 rounding.
    assert jnp.allclose(jnp.sum(out, axis=-1), jnp.ones((B,)), atol=1e-3)

    print("KERNEL_OK")
</pallas_src>

<mosaic_0001>
module attributes {stable_mosaic.version = 11 : i64} {
  func.func @_decoder_kernel(%arg0: i32, %arg1: i32, %arg2: memref<16x128xbf16, #tpu.memory_space<vmem>>, %arg3: memref<128x128xbf16, #tpu.memory_space<vmem>>, %arg4: memref<1x128xf32, #tpu.memory_space<vmem>>, %arg5: memref<16x128xf32, #tpu.memory_space<vmem>>, %arg6: memref<16x1xf32, #tpu.memory_space<vmem>>, %arg7: memref<16x1xf32, #tpu.memory_space<vmem>>) attributes {dimension_semantics = [#tpu.dimension_semantics<parallel>, #tpu.dimension_semantics<arbitrary>], iteration_bounds = array<i64: 1, 1>, scalar_prefetch = 0 : i64, scratch_operands = 2 : i64, tpu.core_type = #tpu.core_type<tc>, window_params = [{transform_indices = @transform_0, window_bounds = array<i64: 16, 128>}, {transform_indices = @transform_1, window_bounds = array<i64: 128, 128>}, {transform_indices = @transform_2, window_bounds = array<i64: 1, 128>}, {transform_indices = @transform_3, window_bounds = array<i64: 16, 128>}]} {
    %c0 = arith.constant 0 : index
    %c0_0 = arith.constant 0 : index
    %0 = vector.load %arg2[%c0, %c0_0] : memref<16x128xbf16, #tpu.memory_space<vmem>>, vector<16x128xbf16>
    %c0_1 = arith.constant 0 : index
    %c0_2 = arith.constant 0 : index
    %1 = vector.load %arg3[%c0_1, %c0_2] : memref<128x128xbf16, #tpu.memory_space<vmem>>, vector<128x128xbf16>
    %cst = arith.constant dense<0.000000e+00> : vector<16x128xf32>
    %2 = tpu.matmul %0, %1, %cst {dimension_numbers = #tpu.dot_dimension_numbers<[1], [0], [0], [1], [0, 0, 1, 1], [], []>} : vector<16x128xbf16>, vector<128x128xbf16>, vector<16x128xf32> -> vector<16x128xf32>
    %c0_3 = arith.constant 0 : index
    %c0_4 = arith.constant 0 : index
    %3 = vector.load %arg4[%c0_3, %c0_4] : memref<1x128xf32, #tpu.memory_space<vmem>>, vector<1x128xf32>
    %4 = vector.broadcast %3 : vector<1x128xf32> to vector<16x128xf32>
    %5 = arith.addf %2, %4 : vector<16x128xf32>
    %c128_i32 = arith.constant 128 : i32
    %6 = arith.muli %arg1, %c128_i32 : i32
    %7 = tpu.assume_multiple %6, 128 : i32
    %c0_5 = arith.constant 0 : index
    %8 = arith.index_cast %7 : i32 to index
    %9 = vector.load %arg5[%c0_5, %8] : memref<16x128xf32, #tpu.memory_space<vmem>>, vector<16x128xf32>
    tpu.vector_store %arg5[%c0_5, %8], %5 {strides = array<i32>} : memref<16x128xf32, #tpu.memory_space<vmem>>, vector<16x128xf32>,
    %cst_6 = arith.constant dense<0xFF800000> : vector<16xf32>
    %10 = vector.multi_reduction <maximumf>, %5, %cst_6 [1] : vector<16x128xf32> to vector<16xf32>
    %11 = vector.shape_cast %10 : vector<16xf32> to vector<16x1xf32>
    %c0_i32 = arith.constant 0 : i32
    %12 = arith.cmpi eq, %arg1, %c0_i32 : i32
    %13 = arith.extui %12 : i1 to i32
    %c0_i32_7 = arith.constant 0 : i32
    %14 = arith.cmpi ne, %13, %c0_i32_7 : i32
    scf.if %14 {
      %cst_14 = arith.constant 0xFF800000 : f32
      %21 = vector.broadcast %cst_14 : f32 to vector<16x1xf32>
      %c0_15 = arith.constant 0 : index
      %c0_16 = arith.constant 0 : index
      %22 = vector.load %arg6[%c0_15, %c0_16] : memref<16x1xf32, #tpu.memory_space<vmem>>, vector<16x1xf32>
      tpu.vector_store %arg6[%c0_15, %c0_16], %21 {strides = array<i32>} : memref<16x1xf32, #tpu.memory_space<vmem>>, vector<16x1xf32>,
    } else {
    }
    %c0_8 = arith.constant 0 : index
    %c0_9 = arith.constant 0 : index
    %15 = vector.load %arg6[%c0_8, %c0_9] : memref<16x1xf32, #tpu.memory_space<vmem>>, vector<16x1xf32>
    %16 = arith.maximumf %15, %11 : vector<16x1xf32>
    %c0_10 = arith.constant 0 : index
    %c0_11 = arith.constant 0 : index
    %17 = vector.load %arg6[%c0_10, %c0_11] : memref<16x1xf32, #tpu.memory_space<vmem>>, vector<16x1xf32>
    tpu.vector_store %arg6[%c0_10, %c0_11], %16 {strides = array<i32>} : memref<16x1xf32, #tpu.memory_space<vmem>>, vector<16x1xf32>,
    %c0_i32_12 = arith.constant 0 : i32
    %18 = arith.cmpi eq, %arg1, %c0_i32_12 : i32
    %19 = arith.extui %18 : i1 to i32
    %c0_i32_13 = arith.constant 0 : i32
    %20 = arith.cmpi ne, %19, %c0_i32_13 : i32
    scf.if %20 {
      %c0_14 = arith.constant 0 : index
      %c0_15 = arith.constant 0 : index
      %21 = vector.load %arg6[%c0_14, %c0_15] : memref<16x1xf32, #tpu.memory_space<vmem>>, vector<16x1xf32>
      %cst_16 = arith.constant 0.000000e+00 : f32
      %22 = vector.broadcast %cst_16 : f32 to vector<16x1xf32>
      %c0_17 = arith.constant 0 : index
      %c0_18 = arith.constant 0 : index
      %23 = vector.load %arg7[%c0_17, %c0_18] : memref<16x1xf32, #tpu.memory_space<vmem>>, vector<16x1xf32>
      tpu.vector_store %arg7[%c0_17, %c0_18], %22 {strides = array<i32>} : memref<16x1xf32, #tpu.memory_space<vmem>>, vector<16x1xf32>,
      %c0_19 = arith.constant 0 : index
      %c0_20 = arith.constant 0 : index
      %24 = vector.load %arg5[%c0_19, %c0_20] : memref<16x128xf32, #tpu.memory_space<vmem>>, vector<16x128xf32>
      %25 = vector.broadcast %21 : vector<16x1xf32> to vector<16x128xf32>
      %26 = arith.subf %24, %25 : vector<16x128xf32>
      %27 = math.exp %26 : vector<16x128xf32>
      %c0_21 = arith.constant 0 : index
      %c0_22 = arith.constant 0 : index
      %28 = vector.load %arg5[%c0_21, %c0_22] : memref<16x128xf32, #tpu.memory_space<vmem>>, vector<16x128xf32>
      tpu.vector_store %arg5[%c0_21, %c0_22], %27 {strides = array<i32>} : memref<16x128xf32, #tpu.memory_space<vmem>>, vector<16x128xf32>,
      %c0_23 = arith.constant 0 : index
      %c0_24 = arith.constant 0 : index
      %29 = vector.load %arg7[%c0_23, %c0_24] : memref<16x1xf32, #tpu.memory_space<vmem>>, vector<16x1xf32>
      %cst_25 = arith.constant dense<0.000000e+00> : vector<16xf32>
      %30 = vector.multi_reduction <add>, %27, %cst_25 [1] : vector<16x128xf32> to vector<16xf32>
      %31 = vector.shape_cast %30 : vector<16xf32> to vector<16x1xf32>
      %32 = arith.addf %29, %31 : vector<16x1xf32>
      %c0_26 = arith.constant 0 : index
      %c0_27 = arith.constant 0 : index
      %33 = vector.load %arg7[%c0_26, %c0_27] : memref<16x1xf32, #tpu.memory_space<vmem>>, vector<16x1xf32>
      tpu.vector_store %arg7[%c0_26, %c0_27], %32 {strides = array<i32>} : memref<16x1xf32, #tpu.memory_space<vmem>>, vector<16x1xf32>,
      %c0_28 = arith.constant 0 : index
      %c0_29 = arith.constant 0 : index
      %34 = vector.load %arg7[%c0_28, %c0_29] : memref<16x1xf32, #tpu.memory_space<vmem>>, vector<16x1xf32>
      %cst_30 = arith.constant 1.000000e+00 : f32
      %35 = vector.broadcast %cst_30 : f32 to vector<16x1xf32>
      %36 = arith.divf %35, %34 : vector<16x1xf32>
      %c0_31 = arith.constant 0 : index
      %c0_32 = arith.constant 0 : index
      %37 = vector.load %arg5[%c0_31, %c0_32] : memref<16x128xf32, #tpu.memory_space<vmem>>, vector<16x128xf32>
      %38 = vector.broadcast %36 : vector<16x1xf32> to vector<16x128xf32>
      %39 = arith.mulf %37, %38 : vector<16x128xf32>
      %c0_33 = arith.constant 0 : index
      %c0_34 = arith.constant 0 : index
      %40 = vector.load %arg5[%c0_33, %c0_34] : memref<16x128xf32, #tpu.memory_space<vmem>>, vector<16x128xf32>
      tpu.vector_store %arg5[%c0_33, %c0_34], %39 {strides = array<i32>} : memref<16x128xf32, #tpu.memory_space<vmem>>, vector<16x128xf32>,
    } else {
    }
    return
  }
  func.func @transform_0(%arg0: i32, %arg1: i32) -> (i32, i32) {
    %c0_i32 = arith.constant 0 : i32
    %c0_i32_0 = arith.constant 0 : i32
    return %arg0, %c0_i32 : i32, i32
  }
  func.func @transform_1(%arg0: i32, %arg1: i32) -> (i32, i32) {
    %c0_i32 = arith.constant 0 : i32
    %c0_i32_0 = arith.constant 0 : i32
    return %c0_i32, %arg1 : i32, i32
  }
  func.func @transform_2(%arg0: i32, %arg1: i32) -> (i32, i32) {
    %c0_i32 = arith.constant 0 : i32
    %c0_i32_0 = arith.constant 0 : i32
    return %c0_i32, %arg1 : i32, i32
  }
  func.func @transform_3(%arg0: i32, %arg1: i32) -> (i32, i32) {
    %c0_i32 = arith.constant 0 : i32
    %c0_i32_0 = arith.constant 0 : i32
    return %arg0, %c0_i32 : i32, i32
  }
}

</mosaic_0001>

<bundles_post_ra>
// kernel: tpu_custom_call.1
= control target key start
LH: loop header
LB: loop body
LE: loop exit
PB: predicated region body
PF: predicated region fallthrough
CT: control target
= control target key end

     0   :  { %8 = vsyncpa [#allocation5], 0  ;;  %s485_s0 = inlined_call_operand.hbm [shape: bf16[16,128], index: 0, kind: input, shape index: {}]   ;;  %s486_s1 = inlined_call_operand.hbm [shape: bf16[128,128], index: 1, kind: input, shape index: {}]   ;;  %s487_s2 = inlined_call_operand.vmem [shape: f32[1,128], index: 2, kind: input, shape index: {}]   ;;  %s488_s3 = inlined_call_operand.hbm [shape: f32[16,128], index: 3, kind: output, shape index: {}]  }
   0x1   :  { %9 = vsyncpa [#allocation8], 0 }
   0x2   :  { %10 = vsyncpa [#allocation6], 0  ;;  %s407_s12 = smov [#allocation4]   ;;  %s335_s16 = scalar_lea.hbm %s485_s0, 128 }
   0x3   :  { %s16_s13 = sshll.u32 %s407_s12, 4  ;;  %p336_p0 = scmp.ne.s32.totalorder %s485_s0, %s335_s16  ;;  %s17_s13 = int_to_ptr.vmem [resolvable:$true] %s16_s13 }
   0x4   :  { %p339_p1 = scmp.lt.u32.totalorder %s335_s16, %s485_s0 }
   0x6   :  { %p341_p2 = pnand %p339_p1, %p336_p0 }
   0x8   :  { %344 = shalt.err (!%p341_p2)
}
   0x9   :  { %s345_s21 = scalar_lea.vmem %s17_s13, 128  ;;  %p350_p4 = scmp.lt.s32.totalorder %s17_s13, %s17_s13 }
   0xa   :  { %p346_p3 = scmp.ne.s32.totalorder %s17_s13, %s345_s21  ;;  %p351_p5 = scmp.lt.s32.totalorder %s345_s21, %s345_s21 }
   0xc   :  { %p352_p6 = por %p351_p5, %p350_p4 }
   0xe   :  { %p353_p7 = pnand %p352_p6, %p346_p3 }
  0x10   :  { %356 = shalt.err (!%p353_p7)
}
  0x11   :  { %s408_s22 = smov 64   ;;  %s409_s23 = smov 4  }
  0x12   :  { %22 = dma.hbm_to_vmem [thread:$0]  %s485_s0, 128, %s17_s13, [#allocation5], %s408_s22, %s408_s22, %s409_s23  }
  0x13   :  { %s410_s26 = smov [#allocation7]   ;;  %s357_s30 = scalar_lea.hbm %s486_s1, 1024 }
  0x14   :  { %s28_s27 = sshll.u32 %s410_s26, 4  ;;  %p358_p8 = scmp.ne.s32.totalorder %s486_s1, %s357_s30  ;;  %s29_s27 = int_to_ptr.vmem [resolvable:$true] %s28_s27 }
  0x15   :  { %p361_p9 = scmp.lt.u32.totalorder %s357_s30, %s486_s1 }
  0x17   :  { %p363_p10 = pnand %p361_p9, %p358_p8 }
  0x19   :  { %366 = shalt.err (!%p363_p10)
}
  0x1a   :  { %s367_s8 = scalar_lea.vmem %s29_s27, 1024  ;;  %p372_p12 = scmp.lt.s32.totalorder %s29_s27, %s29_s27 }
  0x1b   :  { %p368_p11 = scmp.ne.s32.totalorder %s29_s27, %s367_s8  ;;  %p373_p13 = scmp.lt.s32.totalorder %s367_s8, %s367_s8 }
  0x1d   :  { %p374_p0 = por %p373_p13, %p372_p12 }
  0x1f   :  { %p375_p1 = pnand %p374_p0, %p368_p11 }
  0x21   :  { %378 = shalt.err (!%p375_p1)
}
  0x22   :  { %34 = dma.hbm_to_vmem [thread:$0]  %s486_s1, 1024, %s29_s27, [#allocation8], %s408_s22, %s408_s22, %s409_s23  }
  0x23   :  { %401 = dma.done.wait [#allocation5], 128  }
  0x24   :  { %402 = vsyncadd [#allocation5], 4294967168 }
  0x25   :  { %403 = dma.done.wait [#allocation8], 1024  }
  0x26   :  { %404 = vsyncadd [#allocation8], 4294966272  ;;  %v411_v0 = vmov 0.0   ;;  %vm412_vm0 = vmmov 0   ;;  %v318_v1 = vld [vmem:[#allocation7] sm:$0xff]   ;;  %v319_v2 = vld [vmem:[#allocation7 + $0x8] sm:$0xff]  }
  0x27   :  { %285 = vmatprep.subr.bf16.mxu0 %v411_v0  ;;  %301 = vmatprep.mubr.msk.bf16.mxu0 %vm412_vm0, %v411_v0  ;;  %v320_v3 = vld [vmem:[#allocation7 + $0x10] sm:$0xff]   ;;  %v321_v4 = vld [vmem:[#allocation7 + $0x18] sm:$0xff]   ;;  %v322_v5 = vld [vmem:[#allocation7 + $0x20] sm:$0xff]   ;;  %vm178_vm1 = vcmask 7168   ;;  %v413_v10 = vmov -inf   ;;  %v414_v18 = vmov 0  }
  0x28   :  { %286 = vmatpush3.bf16.msra.mxu0 %v318_v1  ;;  %v323_v6 = vld [vmem:[#allocation7 + $0x28] sm:$0xff]   ;;  %v324_v7 = vld [vmem:[#allocation7 + $0x30] sm:$0xff]   ;;  %v325_v8 = vld [vmem:[#allocation7 + $0x38] sm:$0xff]   ;;  %179 = vst.msk [vmem:[#allocation2] sm:$0xff] %vm178_vm1, %v413_v10  ;;  %316 = vset.pattern.permute.xlu1 %v414_v18 }
  0x29   :  { %287 = vmatprep.subr.bf16.mxu0 %v411_v0  ;;  %v326_v9 = vld [vmem:[#allocation4] sm:$0xff]   ;;  %180 = vst.msk [vmem:[#allocation2 + $0x8] sm:$0xff] %vm178_vm1, %v413_v10  ;;  %193 = vst.msk [vmem:[#allocation3] sm:$0xff] %vm178_vm1, %v411_v0  ;;  %317 = vset.pattern.permute.xlu0 %v414_v18 }
  0x2a   :  { %194 = vst.msk [vmem:[#allocation3 + $0x8] sm:$0xff] %vm178_vm1, %v411_v0  ;;  %v266_v11 = vld [vmem:[%s487_s2] ss:$0 sm:$0xff]  ;;  %s415_s2 = smov [#allocation9]  }
  0x2b   :  { %s252_s11 = sshll.u32 %s415_s2, 4  ;;  %s253_s11 = int_to_ptr.vmem [resolvable:$true] %s252_s11 }
  0x2c   :  { %288 = vmatpush3.bf16.msra.mxu0 %v319_v2  ;;  %s379_s12 = scalar_lea.vmem %s253_s11, 256  ;;  %p384_p3 = scmp.lt.s32.totalorder %s253_s11, %s253_s11 }
  0x2d   :  { %289 = vmatprep.subr.bf16.mxu0 %v411_v0  ;;  %p380_p2 = scmp.ne.s32.totalorder %s253_s11, %s379_s12  ;;  %p385_p4 = scmp.lt.s32.totalorder %s379_s12, %s379_s12 }
  0x2f   :  { %v181_v19 = vld [vmem:[#allocation2] sm:$0xff]  ;;  %p386_p5 = por %p385_p4, %p384_p3 }
  0x30   :  { %290 = vmatpush3.bf16.msra.mxu0 %v320_v3  ;;  %v182_v22 = vld [vmem:[#allocation2 + $0x8] sm:$0xff]  ;;  %v215_v35 = vld [vmem:[#allocation3] sm:$0xff] }
  0x31   :  { %291 = vmatprep.subr.bf16.mxu0 %v411_v0  ;;  %v216_v38 = vld [vmem:[#allocation3 + $0x8] sm:$0xff]  ;;  %p387_p6 = pnand %p386_p5, %p380_p2 }
  0x34   :  { %292 = vmatpush3.bf16.msra.mxu0 %v321_v4 }
  0x35   :  { %293 = vmatprep.subr.bf16.mxu0 %v411_v0 }
  0x38   :  { %294 = vmatpush3.bf16.msra.mxu0 %v322_v5 }
  0x39   :  { %295 = vmatprep.subr.bf16.mxu0 %v411_v0 }
  0x3c   :  { %296 = vmatpush3.bf16.msra.mxu0 %v323_v6 }
  0x3d   :  { %297 = vmatprep.subr.bf16.mxu0 %v411_v0 }
  0x40   :  { %298 = vmatpush3.bf16.msra.mxu0 %v324_v7 }
  0x41   :  { %299 = vmatprep.subr.bf16.mxu0 %v411_v0 }
  0x44   :  { %300 = vmatpush3.bf16.msra.mxu0 %v325_v8 }
  0x47   :  { %302 = vmatmul.mubr.bf16.vlgmr.msra.gmra.mrb[0].mxu0 %v326_v9 }
 0x11a   :  { %v157_v12 = vpop.f32.mrb[0].mxu0 }
 0x11b   :  { %v158_v13 = vadd.f32 %v266_v11, %v157_v12  ;;  %v303_v14 = vpop.f32.mrb[1].mxu0 }
 0x11c   :  { %v160_v15 = vpop.f32.mrb[2].mxu0 }
 0x11d   :  { %170 = vmax.xlane.f32.xlu0 %v158_v13  ;;  %v304_v16 = vpop.f32.mrb[3].mxu0  ;;  %v161_v17 = vadd.f32 %v266_v11, %v160_v15 }
 0x121   :  { %172 = vmax.xlane.f32.xlu0 %v161_v17 }
 0x1aa   :  { %v171_v20 = vpop.xlane.xlu0 %170 }
 0x1ab   :  { %v183_v21 = vmax.f32 %v181_v19, %v171_v20 }
 0x1ad   :  { %186 = vst.msk [vmem:[#allocation2] sm:$0xff] %vm178_vm1, %v183_v21 }
 0x1ae   :  { %v173_v23 = vpop.xlane.xlu0 %172 }
 0x1af   :  { %v184_v24 = vmax.f32 %v182_v22, %v173_v23 }
 0x1b1   :  { %187 = vst.msk [vmem:[#allocation2 + $0x8] sm:$0xff] %vm178_vm1, %v184_v24 }
 0x1b4   :  { %v191_v25 = vld [vmem:[#allocation2] sm:$0xff] }
 0x1b5   :  { %199 = vperm.xlu1 %316, %v191_v25  }
 0x1b8   :  { %v192_v26 = vld [vmem:[#allocation2 + $0x8] sm:$0xff] }
 0x1b9   :  { %204 = vperm.xlu1 %316, %v192_v26  }
 0x234   :  { %v200_v27 = vpop.permute.xlu1 %199 }
 0x235   :  { %v207_v28 = vsub.f32 %v158_v13, %v200_v27 }
 0x237   :  { %v209_v29 = vmul.f32 1.442695, %v207_v28 }
 0x238   :  { %v205_v30 = vpop.permute.xlu1 %204 }
 0x239   :  { %327 = vpow2.f32 %v209_v29  ;;  %v208_v31 = vsub.f32 %v161_v17, %v205_v30 }
 0x23b   :  { %v211_v32 = vmul.f32 1.442695, %v208_v31 }
 0x23d   :  { %329 = vpow2.f32 %v211_v32 }
 0x243   :  { %v328_v33 = vpop.eup %327 }
 0x244   :  { %217 = vadd.xlane.f32.xlu0 %v328_v33 }
 0x247   :  { %v330_v34 = vpop.eup %329 }
 0x248   :  { %219 = vadd.xlane.f32.xlu1 %v330_v34 }
 0x2d1   :  { %v218_v36 = vpop.xlane.xlu0 %217 }
 0x2d2   :  { %v221_v37 = vadd.f32 %v218_v36, %v215_v35 }
 0x2d4   :  { %223 = vst.msk [vmem:[#allocation3] sm:$0xff] %vm178_vm1, %v221_v37 }
 0x2d5   :  { %v220_v39 = vpop.xlane.xlu1 %219 }
 0x2d6   :  { %v222_v40 = vadd.f32 %v220_v39, %v216_v38 }
 0x2d8   :  { %224 = vst.msk [vmem:[#allocation3 + $0x8] sm:$0xff] %vm178_vm1, %v222_v40 }
 0x2db   :  { %v225_v41 = vld [vmem:[#allocation3] sm:$0xff] }
 0x2dc   :  { %331 = vrcp.f32 %v225_v41 }
 0x2df   :  { %v226_v42 = vld [vmem:[#allocation3 + $0x8] sm:$0xff] }
 0x2e0   :  { %333 = vrcp.f32 %v226_v42 }
 0x2e6   :  { %v332_v43 = vpop.eup %331 }
 0x2e7   :  { %235 = vperm.xlu0 %317, %v332_v43  }
 0x2ea   :  { %v334_v44 = vpop.eup %333 }
 0x2eb   :  { %240 = vperm.xlu1 %316, %v334_v44  }
 0x366   :  { %v236_v45 = vpop.permute.xlu0 %235 }
 0x367   :  { %v243_v46 = vmul.f32 %v328_v33, %v236_v45 }
 0x369   :  { %245 = vst [vmem:[#allocation9] sm:$0xff] %v243_v46 }
 0x36a   :  { %v241_v47 = vpop.permute.xlu1 %240 }
 0x36b   :  { %v244_v48 = vmul.f32 %v330_v34, %v241_v47 }
 0x36d   :  { %246 = vst [vmem:[#allocation9 + $0x8] sm:$0xff] %v244_v48 }
 0x36e   :  { %390 = shalt.err (!%p387_p6)
}
 0x36f   :  { %s391_s15 = scalar_lea.hbm %s488_s3, 256 }
 0x370   :  { %p392_p7 = scmp.ne.s32.totalorder %s488_s3, %s391_s15  ;;  %p395_p8 = scmp.lt.u32.totalorder %s391_s15, %s488_s3 }
 0x372   :  { %p397_p9 = pnand %p395_p8, %p392_p7 }
 0x374   :  { %400 = shalt.err (!%p397_p9)
}
 0x375   :  { %s416_s20 = smov 128   ;;  %s417_s21 = smov 8  }
 0x376   :  { %258 = dma.vmem_to_hbm [thread:$0]  %s253_s11, 256, %s488_s3, [#allocation6], %s416_s20, %s416_s20, %s417_s21  }
 0x377   :  { %405 = dma.done.wait [#allocation6], 256  }
 0x378   :  { %406 = vsyncadd [#allocation6], 4294967040 }
 0x379   :  { %262 = vsyncpa [#allocation5], 1 }
 0x37a   :  { %263 = vsyncpa [#allocation8], 1 }
 0x37b   :  { %264 = vsyncpa [#allocation6], 1 }

</bundles_post_ra>
